<compile_context>
chip_gen: v7x
topology: tpu7x:2x2x1
jax: 0.10.0
libtpu: 0.0.40
codegen_flags: <defaults>
</compile_context>

<pallas_src>
import functools

import jax
import jax.numpy as jnp
from jax import lax
from jax.experimental import pallas as pl
from jax.experimental.pallas import tpu as pltpu

NEG_SLOPE = 0.01
HIGHEST = jax.lax.Precision.HIGHEST


def _round_up(x, m):
    return -(-x // m) * m


# ----------------------------------------------------------------------------
# Kernel 1: per-edge encoder, hoisted out of the node grid (runs once over E).
#   ftel[:, :KD] = mean_L(edge_feat) @ w_enc + b_enc        (ft)
#   ftel[:, KD:] = mean_L(edge_feat) @ w_el  + b_el          (el, attn_l folded)
# ----------------------------------------------------------------------------
def edge_encoder_kernel(ef_ref, w_ref, b_ref, out_ref):
    # ef_ref: (TILE_E, d_in) f32, w_ref: (d_in, KD+K) f32, b_ref: (1, KD+K) f32
    out_ref[...] = (jnp.dot(ef_ref[...], w_ref[...],
                            preferred_element_type=jnp.float32,
                            precision=HIGHEST)
                    + b_ref[...])


# ----------------------------------------------------------------------------
# Kernel 2: edge softmax + aggregation, grid = (N tiles "parallel",
#                                               E tiles "arbitrary").
# ----------------------------------------------------------------------------
def aggregate_kernel(dst_ref, ftel_ref, nf_ref, w_r_ref, el_max_ref,
                     out_ref, acc_ref, *, num_heads, out_dim, neg_slope):
    # dst_ref    : (1, TILE_E)       i32  destination node id per edge (-1 = pad)
    # ftel_ref   : (TILE_E, KD+K)    f32  [ft | el] for this edge tile
    # nf_ref     : (TILE_N, d_in)    f32  node features of this node tile
    # w_r_ref    : (d_in, K)         f32  attn_r weight
    # el_max_ref : (1, K)            f32  global max of el (softmax shift bound)
    # out_ref    : (TILE_N, KD)      f32
    # acc_ref    : (TILE_N, KD+K)    f32  VMEM scratch: [numerator | denominator]
    K, D = num_heads, out_dim
    KD = K * D
    f32 = jnp.float32
    tile_n = nf_ref.shape[0]
    tile_e = ftel_ref.shape[0]
    e_step = pl.program_id(1)

    @pl.when(e_step == 0)
    def _():
        acc_ref[...] = jnp.zeros_like(acc_ref)

    def leaky(x):
        return jnp.where(x >= 0, x, neg_slope * x)

    # attention logit contribution of the destination nodes (tiny matmul).
    er = jnp.dot(nf_ref[...], w_r_ref[...],
                 preferred_element_type=f32, precision=HIGHEST)        # (TILE_N, K)

    # 0/1 incidence mask: mask[n, e] = 1 iff dst[e] == global node id of row n.
    n_base = pl.program_id(0) * tile_n
    row_ids = lax.broadcasted_iota(jnp.int32, (tile_n, tile_e), 0) + n_base
    mask = (row_ids == dst_ref[...]).astype(f32)                       # (TILE_N, TILE_E)

    # Gather er[dst] to edges with a transposed-operand incidence matmul
    # (no mask_en / dst_col needed).  Edges whose dst is outside this node tile
    # get er_g = 0; they are excluded from denom/output by `mask` below.
    er_g = lax.dot_general(mask, er, (((0,), (0,)), ((), ())),
                           preferred_element_type=f32,
                           precision=HIGHEST)                          # (TILE_E, K)

    ftel = ftel_ref[...]
    ft = ftel[:, :KD]                                                  # (TILE_E, KD)
    el = ftel[:, KD:]                                                  # (TILE_E, K)

    e = leaky(el + er_g)                                               # (TILE_E, K)
    # Per-destination softmax shift: leaky(max_E el + er[dst]) >= e for every
    # edge of that destination (leaky_relu is monotone), it is identical for all
    # edges of a destination and across E tiles, so exp(e - shift) <= 1 and
    # partial sums across E tiles add directly.  (For extremely wide logit
    # spreads a true per-destination max would be preferable.)
    shift = leaky(el_max_ref[...] + er_g)
    p = jnp.exp(e - shift)                                             # (TILE_E, K) f32

    # attn_drop has p=0.0 -> identity; activation=None.
    # TODO(synk): in-kernel dropout via pltpu.prng_* if attn_drop > 0 is needed.

    # Fused numerator + denominator: ONE incidence matmul over [p*ft | p].
    pw = jnp.concatenate(
        [p[:, k:k + 1] * ft[:, k * D:(k + 1) * D] for k in range(K)] + [p],
        axis=1)                                                        # (TILE_E, KD+K)
    acc_ref[...] += jnp.dot(mask, pw, preferred_element_type=f32,
                            precision=HIGHEST)                         # (TILE_N, KD+K)

    @pl.when(e_step == pl.num_programs(1) - 1)
    def _():
        num = acc_ref[:, :KD]                                          # (TILE_N, KD)
        denom = acc_ref[:, KD:]                                        # (TILE_N, K)
        inv = 1.0 / jnp.maximum(denom, 1e-30)   # zero in-degree node -> 0 output
        out_ref[...] = jnp.concatenate(
            [num[:, k * D:(k + 1) * D] * inv[:, k:k + 1] for k in range(K)],
            axis=1)


def intra_metapath_aggregation(node_feat, edge_feat, dst, params,
                               num_heads, out_dim, neg_slope=NEG_SLOPE):
    """node_feat (N, d_in), edge_feat (E, L, d_in), dst (E,) -> (N, K, d_out)."""
    N, d_in = node_feat.shape
    E, L, _ = edge_feat.shape
    K, D = num_heads, out_dim
    KD = K * D
    w_enc, b_enc, attn_l, w_r = params
    f32 = jnp.float32

    # ---- fold attn_l into the encoder weight/bias: el = ef_mean @ w_el + b_el ----
    attn_l_f = attn_l.reshape(K, D).astype(f32)
    w_el = jnp.einsum('dkx,kx->dk', w_enc.astype(f32).reshape(d_in, K, D),
                      attn_l_f)                                        # (d_in, K)
    b_el = jnp.einsum('kx,kx->k', b_enc.astype(f32).reshape(K, D),
                      attn_l_f)                                        # (K,)
    w_cat = jnp.concatenate([w_enc.astype(f32), w_el], axis=1)         # (d_in, KD+K)
    b_cat = jnp.concatenate([b_enc.astype(f32), b_el]).reshape(1, KD + K)

    # mean over metapath length L (part of the "linear" instance encoder).
    ef_mean = edge_feat.astype(f32).mean(axis=1)                       # (E, d_in)

    # ---- tiling ----
    TILE_N = min(128, _round_up(N, 8))   # 256 worth trying on v6e; keep 128 on v5e/v7x
    N_pad = _round_up(N, TILE_N)
    TILE_E = _round_up(E, 8) if E <= 512 else 512
    E_pad = _round_up(E, TILE_E)

    nf = node_feat.astype(f32)
    if N_pad != N:
        nf = jnp.pad(nf, ((0, N_pad - N), (0, 0)))
    dst_i = dst.astype(jnp.int32)
    if E_pad != E:
        ef_mean = jnp.pad(ef_mean, ((0, E_pad - E), (0, 0)))
        dst_i = jnp.pad(dst_i, (0, E_pad - E), constant_values=-1)     # never matches
    dst_row = dst_i.reshape(1, E_pad)

    # ---- kernel 1: edge encoder (hoisted: runs ONCE over E, not per node tile) ----
    ftel = pl.pallas_call(
        edge_encoder_kernel,
        out_shape=jax.ShapeDtypeStruct((E_pad, KD + K), f32),
        grid=(E_pad // TILE_E,),
        in_specs=[
            pl.BlockSpec((TILE_E, d_in), lambda i: (i, 0)),
            pl.BlockSpec((d_in, KD + K), lambda i: (0, 0)),
            pl.BlockSpec((1, KD + K), lambda i: (0, 0)),
        ],
        out_specs=pl.BlockSpec((TILE_E, KD + K), lambda i: (i, 0)),
        compiler_params=pltpu.CompilerParams(dimension_semantics=("parallel",)),
    )(ef_mean, w_cat, b_cat)

    # global upper bound of el for the softmax shift (cheap XLA reduce).
    el_max = jnp.max(ftel[:E, KD:], axis=0, keepdims=True)             # (1, K)

    # ---- kernel 2: edge softmax + aggregation ----
    grid = (N_pad // TILE_N, E_pad // TILE_E)
    est_bytes = 4 * (2 * (TILE_E * (KD + K + 1) + TILE_N * (d_in + KD))   # double-buffered blocks
                     + d_in * (KD + 2 * K) + K                            # weights / el_max
                     + TILE_N * (KD + K)                                  # accumulator scratch
                     + 2 * TILE_N * TILE_E + 2 * TILE_E * (KD + K))       # mask / pw temporaries
    vmem_limit = int(min(64 * 2 ** 20, max(32 * 2 ** 20, 2 * est_bytes)))

    kernel = functools.partial(aggregate_kernel, num_heads=K, out_dim=D,
                               neg_slope=neg_slope)
    out = pl.pallas_call(
        kernel,
        out_shape=jax.ShapeDtypeStruct((N_pad, KD), f32),
        grid=grid,
        in_specs=[
            pl.BlockSpec((1, TILE_E), lambda i, e: (0, e)),        # dst ids
            pl.BlockSpec((TILE_E, KD + K), lambda i, e: (e, 0)),   # [ft | el]
            pl.BlockSpec((TILE_N, d_in), lambda i, e: (i, 0)),     # node features
            pl.BlockSpec((d_in, K), lambda i, e: (0, 0)),          # attn_r weight
            pl.BlockSpec((1, K), lambda i, e: (0, 0)),             # el_max
        ],
        out_specs=pl.BlockSpec((TILE_N, KD), lambda i, e: (i, 0)),
        scratch_shapes=[pltpu.VMEM((TILE_N, KD + K), f32)],
        compiler_params=pltpu.CompilerParams(
            dimension_semantics=("parallel", "arbitrary"),
            vmem_limit_bytes=vmem_limit),
    )(dst_row, ftel, nf, w_r.astype(f32), el_max)

    return out[:N].reshape(N, K, D)                                    # (N, K, d_out)


def reference(node_feat, edge_feat, dst, params, num_heads, out_dim,
              neg_slope=NEG_SLOPE):
    """Pure-JAX f32 reference of the torch forward (segment ops = DGL message passing)."""
    w_enc, b_enc, attn_l, w_r = params
    E = edge_feat.shape[0]
    N = node_feat.shape[0]
    with jax.default_matmul_precision("highest"):
        ef_mean = edge_feat.mean(axis=1)
        ft = (ef_mean @ w_enc + b_enc.reshape(-1)).reshape(E, num_heads, out_dim)
        el = (ft * attn_l.reshape(1, num_heads, out_dim)).sum(axis=-1)     # (E, K)
        er = node_feat @ w_r                                               # (N, K)
        e = el + er[dst]
        e = jnp.where(e >= 0, e, neg_slope * e)
        m = jax.ops.segment_max(e, dst, num_segments=N)                    # (N, K)
        p = jnp.exp(e - m[dst])
        denom = jax.ops.segment_sum(p, dst, num_segments=N)                # (N, K)
        a = p / denom[dst]
        out = jax.ops.segment_sum(ft * a[:, :, None], dst, num_segments=N)
    return out                                                             # (N, K, D)


if __name__ == "__main__":
    # Small shapes consistent with the module's forward:
    #   N target nodes, E metapath instances (edges), L metapath length,
    #   d_in input features, K heads, d_out per-head output dim.
    N, E, L, d_in, K, d_out = 8, 16, 3, 32, 4, 8

    key = jax.random.PRNGKey(0)
    ks = jax.random.split(key, 7)
    node_feat = jax.random.normal(ks[0], (N, d_in), jnp.float32)
    edge_feat = jax.random.normal(ks[1], (E, L, d_in), jnp.float32)
    # every destination gets >= 1 incoming edge (the reference would otherwise
    # produce 0/0 = NaN for isolated nodes; the kernel emits 0 there).
    dst = jnp.concatenate([jnp.arange(N, dtype=jnp.int32),
                           jax.random.randint(ks[2], (E - N,), 0, N, jnp.int32)])
    dst = jax.random.permutation(ks[6], dst)

    # Deterministic parameter init (shapes from __init__; xavier-style scales).
    w_enc = ((2.0 / (d_in + K * d_out)) ** 0.5
             * jax.random.normal(ks[3], (d_in, K * d_out), jnp.float32))
    b_enc = jnp.zeros((K * d_out,), jnp.float32)
    gain_relu = 2.0 ** 0.5
    attn_l = (gain_relu * (2.0 / (1 + K * d_out)) ** 0.5
              * jax.random.normal(ks[4], (1, K, d_out), jnp.float32))
    w_r = ((2.0 / (d_in + K)) ** 0.5
           * jax.random.normal(ks[5], (d_in, K), jnp.float32))
    params = (w_enc, b_enc, attn_l, w_r)

    out = intra_metapath_aggregation(node_feat, edge_feat, dst, params, K, d_out)
    out = jax.block_until_ready(out)

    ref = reference(node_feat, edge_feat, dst, params, K, d_out)
    assert out.shape == (N, K, d_out), out.shape
    assert bool(jnp.all(jnp.isfinite(out)))
    err = float(jnp.max(jnp.abs(out - ref)))
    # All-f32 softmax/aggregation path: observed error is ~1e-5; the tolerance
    # only leaves headroom for MXU multi-pass precision differences.
    assert jnp.allclose(out, ref, rtol=2e-2, atol=5e-3), err

    print("KERNEL_OK")
</pallas_src>

<mosaic_0001>
module attributes {stable_mosaic.version = 11 : i64} {
  func.func @edge_encoder_kernel(%arg0: i32, %arg1: memref<16x32xf32, #tpu.memory_space<vmem>>, %arg2: memref<32x36xf32, #tpu.memory_space<vmem>>, %arg3: memref<1x36xf32, #tpu.memory_space<vmem>>, %arg4: memref<16x36xf32, #tpu.memory_space<vmem>>) attributes {dimension_semantics = [#tpu.dimension_semantics<parallel>], iteration_bounds = array<i64: 1>, scalar_prefetch = 0 : i64, scratch_operands = 0 : i64, tpu.core_type = #tpu.core_type<tc>, window_params = [{transform_indices = @transform_0, window_bounds = array<i64: 16, 32>}, {pipeline_mode = #tpu.pipeline_mode<synchronous>, transform_indices = @transform_1, window_bounds = array<i64: 32, 36>}, {pipeline_mode = #tpu.pipeline_mode<synchronous>, transform_indices = @transform_2, window_bounds = array<i64: 1, 36>}, {transform_indices = @transform_3, window_bounds = array<i64: 16, 36>}]} {
    %c0 = arith.constant 0 : index
    %c0_0 = arith.constant 0 : index
    %0 = vector.load %arg1[%c0, %c0_0] : memref<16x32xf32, #tpu.memory_space<vmem>>, vector<16x32xf32>
    %c0_1 = arith.constant 0 : index
    %c0_2 = arith.constant 0 : index
    %1 = vector.load %arg2[%c0_1, %c0_2] : memref<32x36xf32, #tpu.memory_space<vmem>>, vector<32x36xf32>
    %cst = arith.constant dense<0.000000e+00> : vector<16x36xf32>
    %2 = tpu.matmul %0, %1, %cst {dimension_numbers = #tpu.dot_dimension_numbers<[1], [0], [0], [1], [0, 0, 1, 1], [], []>, precision = #tpu.contract_precision<fp32>} : vector<16x32xf32>, vector<32x36xf32>, vector<16x36xf32> -> vector<16x36xf32>
    %c0_3 = arith.constant 0 : index
    %c0_4 = arith.constant 0 : index
    %3 = vector.load %arg3[%c0_3, %c0_4] : memref<1x36xf32, #tpu.memory_space<vmem>>, vector<1x36xf32>
    %4 = vector.broadcast %3 : vector<1x36xf32> to vector<16x36xf32>
    %5 = arith.addf %2, %4 : vector<16x36xf32>
    %c0_5 = arith.constant 0 : index
    %c0_6 = arith.constant 0 : index
    %6 = vector.load %arg4[%c0_5, %c0_6] : memref<16x36xf32, #tpu.memory_space<vmem>>, vector<16x36xf32>
    tpu.vector_store %arg4[%c0_5, %c0_6], %5 {strides = array<i32>} : memref<16x36xf32, #tpu.memory_space<vmem>>, vector<16x36xf32>,
    return
  }
  func.func @transform_0(%arg0: i32) -> (i32, i32) {
    %c0_i32 = arith.constant 0 : i32
    %c0_i32_0 = arith.constant 0 : i32
    return %arg0, %c0_i32 : i32, i32
  }
  func.func @transform_1(%arg0: i32) -> (i32, i32) {
    %c0_i32 = arith.constant 0 : i32
    %c0_i32_0 = arith.constant 0 : i32
    %c0_i32_1 = arith.constant 0 : i32
    return %c0_i32, %c0_i32_0 : i32, i32
  }
  func.func @transform_2(%arg0: i32) -> (i32, i32) {
    %c0_i32 = arith.constant 0 : i32
    %c0_i32_0 = arith.constant 0 : i32
    %c0_i32_1 = arith.constant 0 : i32
    return %c0_i32, %c0_i32_0 : i32, i32
  }
  func.func @transform_3(%arg0: i32) -> (i32, i32) {
    %c0_i32 = arith.constant 0 : i32
    %c0_i32_0 = arith.constant 0 : i32
    return %arg0, %c0_i32 : i32, i32
  }
}

</mosaic_0001>

<bundles_post_ra>
// kernel: tpu_custom_call.1
= control target key start
LH: loop header
LB: loop body
LE: loop exit
PB: predicated region body
PF: predicated region fallthrough
CT: control target
= control target key end

     0   :  { %8 = vsyncpa [#allocation3], 0  ;;  %s937_s0 = inlined_call_operand.hbm [shape: f32[16,32], index: 0, kind: input, shape index: {}]   ;;  %s938_s1 = inlined_call_operand.hbm [shape: f32[32,36], index: 1, kind: input, shape index: {}]   ;;  %s939_s2 = inlined_call_operand.vmem [shape: f32[1,36], index: 2, kind: input, shape index: {}]   ;;  %s940_s3 = inlined_call_operand.hbm [shape: f32[16,36], index: 3, kind: output, shape index: {}]  }
   0x1   :  { %9 = vsyncpa [#allocation6], 0 }
   0x2   :  { %10 = vsyncpa [#allocation4], 0  ;;  %s852_s12 = smov [#allocation2]   ;;  %s780_s16 = scalar_lea.hbm %s937_s0, 256 }
   0x3   :  { %s16_s13 = sshll.u32 %s852_s12, 4  ;;  %p781_p0 = scmp.ne.s32.totalorder %s937_s0, %s780_s16  ;;  %s17_s13 = int_to_ptr.vmem [resolvable:$true] %s16_s13 }
   0x4   :  { %p784_p1 = scmp.lt.u32.totalorder %s780_s16, %s937_s0 }
   0x6   :  { %p786_p2 = pnand %p784_p1, %p781_p0 }
   0x8   :  { %789 = shalt.err (!%p786_p2)
}
   0x9   :  { %s790_s21 = scalar_lea.vmem %s17_s13, 256  ;;  %p795_p4 = scmp.lt.s32.totalorder %s17_s13, %s17_s13 }
   0xa   :  { %p791_p3 = scmp.ne.s32.totalorder %s17_s13, %s790_s21  ;;  %p796_p5 = scmp.lt.s32.totalorder %s790_s21, %s790_s21 }
   0xc   :  { %p797_p6 = por %p796_p5, %p795_p4 }
   0xe   :  { %p798_p7 = pnand %p797_p6, %p791_p3 }
  0x10   :  { %801 = shalt.err (!%p798_p7)
}
  0x11   :  { %s853_s22 = smov 128   ;;  %s854_s23 = smov 8  }
  0x12   :  { %22 = dma.hbm_to_vmem [thread:$0]  %s937_s0, 256, %s17_s13, [#allocation3], %s853_s22, %s853_s22, %s854_s23  }
  0x13   :  { %s855_s26 = smov [#allocation5]   ;;  %s802_s30 = scalar_lea.hbm %s938_s1, 512 }
  0x14   :  { %s28_s27 = sshll.u32 %s855_s26, 4  ;;  %p803_p8 = scmp.ne.s32.totalorder %s938_s1, %s802_s30  ;;  %s29_s27 = int_to_ptr.vmem [resolvable:$true] %s28_s27 }
  0x15   :  { %p806_p9 = scmp.lt.u32.totalorder %s802_s30, %s938_s1 }
  0x17   :  { %p808_p10 = pnand %p806_p9, %p803_p8 }
  0x19   :  { %811 = shalt.err (!%p808_p10)
}
  0x1a   :  { %s812_s8 = scalar_lea.vmem %s29_s27, 512  ;;  %p817_p12 = scmp.lt.s32.totalorder %s29_s27, %s29_s27 }
  0x1b   :  { %p813_p11 = scmp.ne.s32.totalorder %s29_s27, %s812_s8  ;;  %p818_p13 = scmp.lt.s32.totalorder %s812_s8, %s812_s8 }
  0x1d   :  { %p819_p0 = por %p818_p13, %p817_p12 }
  0x1f   :  { %p820_p1 = pnand %p819_p0, %p813_p11 }
  0x21   :  { %823 = shalt.err (!%p820_p1)
}
  0x22   :  { %34 = dma.hbm_to_vmem [thread:$0]  %s938_s1, 512, %s29_s27, [#allocation6], %s853_s22, %s853_s22, %s854_s23  }
  0x23   :  { %846 = dma.done.wait [#allocation3], 256  }
  0x24   :  { %847 = vsyncadd [#allocation3], 4294967040 }
  0x25   :  { %848 = dma.done.wait [#allocation6], 512  }
  0x26   :  { %849 = vsyncadd [#allocation6], 4294966784  ;;  %vm56_vm0 = vcmask 261120   ;;  %v45_v0 = vld [vmem:[#allocation5] sm:$0xff]  ;;  %v46_v1 = vld [vmem:[#allocation5 + $0x8] sm:$0xff]  ;;  %s856_s11 = smov [#allocation7]  }
  0x27   :  { %v47_v2 = vld [vmem:[#allocation5 + $0x10] sm:$0xff]  ;;  %v64_v3 = vand.u32 4294901760, %v45_v0  ;;  %v67_v4 = vand.u32 4294901760, %v46_v1  ;;  %v48_v5 = vld [vmem:[#allocation5 + $0x18] sm:$0xff]  ;;  %s599_s12 = sshll.u32 %s856_s11, 4  ;;  %vm591_vm1 = vcmask 293888   ;;  %s600_s12 = int_to_ptr.vmem [resolvable:$true] %s599_s12 }
  0x28   :  { %v70_v6 = vand.u32 4294901760, %v47_v2  ;;  %v43_v7 = vld [vmem:[#allocation2] sm:$0xff]  ;;  %v44_v8 = vld [vmem:[#allocation2 + $0x8] sm:$0xff]  ;;  %v73_v9 = vand.u32 4294901760, %v48_v5  ;;  %s824_s13 = scalar_lea.vmem %s600_s12, 256  ;;  %p829_p3 = scmp.lt.s32.totalorder %s600_s12, %s600_s12 }
  0x29   :  { %v58_v10 = vsel %vm56_vm0, %v43_v7, 0  ;;  %v61_v11 = vsel %vm56_vm0, %v44_v8, 0  ;;  %v715_v12 = vpack.c.bf16 %v67_v4, %v64_v3  ;;  %v154_v15 = vsub.f32 %v45_v0, %v64_v3  ;;  %v612_v46 = vld [vmem:[%s939_s2] ss:$0 sm:$0xff]  ;;  %p825_p2 = scmp.ne.s32.totalorder %s600_s12, %s824_s13  ;;  %p830_p4 = scmp.lt.s32.totalorder %s824_s13, %s824_s13 }
  0x2a   :  { %v907_v13 = vand.u32 4294901760, %v58_v10  ;;  %v909_v14 = vand.u32 4294901760, %v61_v11  ;;  %v719_v16 = vpack.c.bf16 %v73_v9, %v70_v6  ;;  %v161_v17 = vsub.f32 %v46_v1, %v67_v4 }
  0x2b   :  { %v168_v18 = vsub.f32 %v47_v2, %v70_v6  ;;  %v175_v19 = vsub.f32 %v48_v5, %v73_v9  ;;  %716 = vmatprep.subr.bf16.mxu1 %v715_v12  ;;  %740 = vmatprep.subr.bf16.mxu0 %v715_v12  ;;  %v155_v22 = vand.u32 4294901760, %v154_v15  ;;  %p831_p5 = por %p830_p4, %p829_p3 }
  0x2c   :  { %v133_v20 = vsub.f32 %v58_v10, %v907_v13  ;;  %v143_v21 = vsub.f32 %v61_v11, %v909_v14  ;;  %718 = vmatpush3.bf16.msra.mxu1 %v715_v12  ;;  %742 = vmatpush3.bf16.msra.mxu0 %v715_v12  ;;  %v162_v23 = vand.u32 4294901760, %v161_v17  ;;  %v731_v44 = vpack.c.bf16 %v161_v17, %v154_v15 }
  0x2d   :  { %v169_v24 = vand.u32 4294901760, %v168_v18  ;;  %v176_v25 = vand.u32 4294901760, %v175_v19  ;;  %720 = vmatprep.subr.bf16.mxu1 %v719_v16  ;;  %744 = vmatprep.subr.bf16.mxu0 %v719_v16  ;;  %v156_v28 = vsub.f32 %v154_v15, %v155_v22  ;;  %v735_v45 = vpack.c.bf16 %v175_v19, %v168_v18  ;;  %p832_p6 = pnand %p831_p5, %p825_p2 }
  0x2e   :  { %v134_v26 = vand.u32 4294901760, %v133_v20  ;;  %v144_v27 = vand.u32 4294901760, %v143_v21  ;;  %v163_v29 = vsub.f32 %v161_v17, %v162_v23  ;;  %v747_v30 = vpack.c.bf16 %v162_v23, %v155_v22 }
  0x2f   :  { %v170_v31 = vsub.f32 %v168_v18, %v169_v24  ;;  %v177_v32 = vsub.f32 %v175_v19, %v176_v25  ;;  %v157_v35 = vand.u32 4294901760, %v156_v28  ;;  %v751_v43 = vpack.c.bf16 %v176_v25, %v169_v24 }
  0x30   :  { %v135_v33 = vsub.f32 %v133_v20, %v134_v26  ;;  %690 = vmatprep.mubr.f32.mxu0 %v134_v26  ;;  %v145_v34 = vsub.f32 %v143_v21, %v144_v27  ;;  %722 = vmatpush3.bf16.msra.mxu1 %v719_v16  ;;  %v164_v36 = vand.u32 4294901760, %v163_v29 }
  0x31   :  { %746 = vmatpush3.bf16.msra.mxu0 %v719_v16  ;;  %v171_v37 = vand.u32 4294901760, %v170_v31  ;;  %v178_v38 = vand.u32 4294901760, %v177_v32 }
  0x32   :  { %v136_v39 = vand.u32 4294901760, %v135_v33  ;;  %v146_v40 = vand.u32 4294901760, %v145_v34  ;;  %748 = vmatprep.subr.bf16.mxu0 %v747_v30  ;;  %v723_v41 = vpack.c.bf16 %v164_v36, %v157_v35 }
  0x33   :  { %v727_v42 = vpack.c.bf16 %v178_v38, %v171_v37 }
  0x34   :  { %657 = vmatprep.mubr.f32.mxu1 %v136_v39  ;;  %691 = vmatmul.mubr.f32.vlgmr.msra.gmra.mrb[0].mxu0 %v144_v27 }
  0x35   :  { %658 = vmatmul.mubr.f32.vlgmr.msra.gmra.mrb[0].mxu1 %v146_v40  ;;  %724 = vmatprep.subr.bf16.mxu1 %v723_v41 }
  0x36   :  { %726 = vmatpush3.bf16.msra.mxu1 %v723_v41  ;;  %750 = vmatpush3.bf16.msra.mxu0 %v747_v30 }
  0x37   :  { %728 = vmatprep.subr.bf16.mxu1 %v727_v42  ;;  %752 = vmatprep.subr.bf16.mxu0 %v751_v43 }
  0x38   :  { %668 = vmatprep.mubr.f32.mxu1 %v907_v13  ;;  %701 = vmatprep.mubr.f32.mxu0 %v907_v13 }
  0x3a   :  { %730 = vmatpush3.bf16.msra.mxu1 %v727_v42  ;;  %754 = vmatpush3.bf16.msra.mxu0 %v751_v43 }
  0x3b   :  { %732 = vmatprep.subr.bf16.mxu1 %v731_v44  ;;  %756 = vmatprep.subr.bf16.mxu0 %v715_v12 }
  0x3d   :  { %669 = vmatmul.mubr.f32.vlgmr.msra.gmra.mrb[0].mxu1 %v909_v14  ;;  %702 = vmatmul.mubr.f32.vlgmr.msra.gmra.mrb[0].mxu0 %v909_v14 }
  0x3e   :  { %734 = vmatpush3.bf16.msra.mxu1 %v731_v44  ;;  %758 = vmatpush3.bf16.msra.mxu0 %v715_v12 }
  0x3f   :  { %736 = vmatprep.subr.bf16.mxu1 %v735_v45  ;;  %760 = vmatprep.subr.bf16.mxu0 %v719_v16 }
  0x40   :  { %679 = vmatprep.mubr.f32.mxu1 %v133_v20  ;;  %712 = vmatprep.mubr.f32.mxu0 %v907_v13 }
  0x42   :  { %738 = vmatpush3.bf16.msra.mxu1 %v735_v45  ;;  %762 = vmatpush3.bf16.msra.mxu0 %v719_v16 }
  0x45   :  { %680 = vmatmul.mubr.f32.vlgmr.msra.gmra.mrb[0].mxu1 %v143_v21  ;;  %713 = vmatmul.mubr.f32.vlgmr.msra.gmra.mrb[0].mxu0 %v909_v14 }
 0x118   :  { %v681_v47 = vpop.f32.mrb[0].mxu1  ;;  %v714_v48 = vpop.f32.mrb[0].mxu0 }
 0x119   :  { %v763_v49 = vadd.f32 %v681_v47, %v612_v46  ;;  %v325_v50 = vpop.f32.mrb[1].mxu1  ;;  %v581_v51 = vpop.f32.mrb[1].mxu0 }
 0x11a   :  { %v765_v52 = vadd.f32 %v612_v46, %v325_v50 }
 0x11b   :  { %v764_v53 = vadd.f32 %v763_v49, %v714_v48 }
 0x11c   :  { %v766_v54 = vadd.f32 %v765_v52, %v581_v51 }
 0x11d   :  { %593 = vst.msk [vmem:[#allocation7 + $0x8] sm:$0xff] %vm591_vm1, %v764_v53 }
 0x11e   :  { %592 = vst.msk [vmem:[#allocation7] sm:$0xff] %vm591_vm1, %v766_v54 }
 0x11f   :  { %835 = shalt.err (!%p832_p6)
}
 0x120   :  { %s836_s15 = scalar_lea.hbm %s940_s3, 256 }
 0x121   :  { %p837_p7 = scmp.ne.s32.totalorder %s940_s3, %s836_s15  ;;  %p840_p8 = scmp.lt.u32.totalorder %s836_s15, %s940_s3 }
 0x123   :  { %p842_p9 = pnand %p840_p8, %p837_p7 }
 0x125   :  { %845 = shalt.err (!%p842_p9)
}
 0x126   :  { %605 = dma.vmem_to_hbm [thread:$0]  %s600_s12, 256, %s940_s3, [#allocation4], %s853_s22, %s853_s22, %s854_s23  }
 0x127   :  { %850 = dma.done.wait [#allocation4], 256  }
 0x128   :  { %851 = vsyncadd [#allocation4], 4294967040 }
 0x129   :  { %609 = vsyncpa [#allocation3], 1 }
 0x12a   :  { %610 = vsyncpa [#allocation6], 1 }
 0x12b   :  { %611 = vsyncpa [#allocation4], 1 }

</bundles_post_ra>
